<compile_context>
chip_gen: v7x
topology: tpu7x:2x2x1
jax: 0.10.0
libtpu: 0.0.40
codegen_flags: <defaults>
</compile_context>

<pallas_src>
import jax
import jax.numpy as jnp
from jax.experimental import pallas as pl
from jax.experimental.pallas import tpu as pltpu


_BIG = 1e30  # "infinite" distance for masked / padded target rows (finite for safety)


def _cdiv(a, b):
    return -(-a // b)


def _round_up(x, k):
    return _cdiv(x, k) * k


def _pick_tile(count, tile, ensure_two=False):
    """Clamp a tile size (multiple of 128) to the padded extent of `count`.

    If ensure_two and the extent spans >=2 lane blocks, cap the tile so the
    grid has >=2 tiles along this axis (v7x: 2 TensorCores share the
    'parallel' axis; a single tile would idle half the chip).
    """
    blocks = max(1, _cdiv(count, 128))
    tblocks = max(1, min(tile // 128, blocks))
    if ensure_two and blocks >= 2:
        tblocks = min(tblocks, _cdiv(blocks, 2))
    return tblocks * 128


# --------------------------------------------------------------------------- #
# Kernels
# --------------------------------------------------------------------------- #
def _nn_gather_kernel(qT_ref, tT_ref, fT_ref, o_ref, min_sc, acc_sc):
    """Online-min over target tiles; feature gather via one-hot MXU matmul."""
    j = pl.program_id(1)

    @pl.when(j == 0)
    def _():
        min_sc[...] = jnp.full_like(min_sc, jnp.inf)
        acc_sc[...] = jnp.zeros_like(acc_sc)

    q = qT_ref[...]                                   # (4, TQ)  [-2x,-2y,-2z,1]
    t = tT_ref[...]                                   # (4, TM)  [x,y,z,|t|^2(+mask)]
    fT = fT_ref[...]                                  # (F, TM)  feature dtype
    tm = t.shape[1]

    # d[i, c] = |t_i|^2 - 2 t_i . q_c   (bias + scale folded into row 3)
    d = jax.lax.dot_general(t, q, (((0,), (0,)), ((), ())),
                            preferred_element_type=jnp.float32)    # (TM, TQ)

    # First-occurrence argmin along the target (sublane) axis — all int32.
    local_min = jnp.min(d, axis=0, keepdims=True)                  # (1, TQ) f32
    iota_col = jax.lax.broadcasted_iota(jnp.int32, (tm, 1), 0)     # (TM, 1)
    cand = jnp.where(d <= local_min, iota_col, tm)                 # (TM, TQ) i32
    local_idx = jnp.min(cand, axis=0, keepdims=True)               # (1, TQ)  i32
    onehot = (iota_col == local_idx).astype(fT.dtype)              # (TM, TQ)

    # Gather selected feature rows on the MXU: (F, TM) @ (TM, TQ) -> (F, TQ).
    g = jax.lax.dot_general(fT, onehot, (((1,), (0,)), ((), ())),
                            preferred_element_type=jnp.float32)

    # Online-min across M tiles (strict '<' => earliest tile wins ties, which
    # matches first-occurrence argmin of the reference).
    better = local_min < min_sc[...]                               # (1, TQ)
    min_sc[...] = jnp.where(better, local_min, min_sc[...])
    acc_sc[...] = jnp.where(better, g, acc_sc[...])

    @pl.when(j == pl.num_programs(1) - 1)
    def _():
        o_ref[...] = acc_sc[...].astype(o_ref.dtype)


def _nn_index_kernel(qT_ref, tT_ref, o_ref, min_sc, idx_sc):
    """Online-min over target tiles; emits the global argmin index per query."""
    j = pl.program_id(1)

    @pl.when(j == 0)
    def _():
        min_sc[...] = jnp.full_like(min_sc, jnp.inf)
        idx_sc[...] = jnp.zeros_like(idx_sc)

    q = qT_ref[...]                                   # (4, TQ)
    t = tT_ref[...]                                   # (4, TM)
    tm = t.shape[1]

    d = jax.lax.dot_general(t, q, (((0,), (0,)), ((), ())),
                            preferred_element_type=jnp.float32)    # (TM, TQ)

    local_min = jnp.min(d, axis=0, keepdims=True)                  # (1, TQ)
    iota_col = jax.lax.broadcasted_iota(jnp.int32, (tm, 1), 0)     # (TM, 1)
    cand = jnp.where(d <= local_min, iota_col, tm)                 # (TM, TQ) i32
    local_idx = jnp.min(cand, axis=0, keepdims=True)               # (1, TQ)  i32

    better = local_min < min_sc[...]
    min_sc[...] = jnp.where(better, local_min, min_sc[...])
    idx_sc[...] = jnp.where(better, local_idx + j * tm, idx_sc[...])

    @pl.when(j == pl.num_programs(1) - 1)
    def _():
        o_ref[...] = idx_sc[...]


# --------------------------------------------------------------------------- #
# Wrapper
# --------------------------------------------------------------------------- #
def upsample_block(query_points, target_points, target_features,
                   q_mask=None, t_mask=None, tile_q=512, tile_m=1024,
                   gather_in_kernel=None):
    """JAX/Pallas equivalent of UpsampleBlock.forward.

    Returns (query_points, query_features) with
      query_features[i] = target_features[argmin_j ||query[i] - target[j]||^2].
    """
    # TODO(synk): q_mask semantics for invalid query rows are implementation-
    # defined in masked_knn_keops (their output is never used downstream); we
    # compute them like any other row.
    n = query_points.shape[0]
    m, fdim = target_features.shape

    if gather_in_kernel is None:
        # Large F (or non-float features): carry indices, gather in the wrapper.
        gather_in_kernel = (fdim <= 256
                            and jnp.issubdtype(target_features.dtype, jnp.floating))

    # Lane-dense tile sizes (multiples of 128), clamped for tiny inputs, and
    # >=2 query tiles when possible so the "parallel" axis feeds both v7x TCs.
    tile_q = _pick_tile(n, tile_q, ensure_two=True)
    tile_m = _pick_tile(m, tile_m)
    n_pad = _round_up(n, tile_q)
    m_pad = _round_up(m, tile_m)

    qp32 = query_points.astype(jnp.float32)
    tp32 = target_points.astype(jnp.float32)

    # qT (4, N): rows = [-2x, -2y, -2z, 1]; padded query columns are all-zero
    # (their 4th row is 0 too — those outputs are sliced off).
    q_aug = jnp.concatenate([-2.0 * qp32, jnp.ones((n, 1), jnp.float32)],
                            axis=1)                                  # (n, 4)
    qT = jnp.pad(q_aug.T, ((0, 0), (0, n_pad - n)))                  # (4, n_pad)

    # tT (4, M): rows = [x, y, z, |t|^2]; mask + M-padding fold into row 3 as
    # _BIG so those rows can never win the argmin.
    tt = jnp.sum(tp32 * tp32, axis=-1)                               # (m,)
    if t_mask is not None:
        tt = jnp.where(t_mask.reshape(-1).astype(jnp.float32) > 0.5,
                       tt, jnp.float32(_BIG))
    t_xyz = jnp.pad(tp32.T, ((0, 0), (0, m_pad - m)))                # (3, m_pad)
    tt_pad = jnp.pad(tt, (0, m_pad - m), constant_values=_BIG)       # (m_pad,)
    tT = jnp.concatenate([t_xyz, tt_pad[None, :]], axis=0)           # (4, m_pad)

    grid = (n_pad // tile_q, m_pad // tile_m)
    cparams = pltpu.CompilerParams(
        dimension_semantics=("parallel", "arbitrary"),
        vmem_limit_bytes=48 * 1024 * 1024)

    if gather_in_kernel:
        # Features lane-dense as (F, M); kernel emits (F, N), transposed back
        # here to keep the module's (n, f_dim) contract.
        fT = jnp.pad(target_features.T, ((0, 0), (0, m_pad - m)))    # (F, m_pad)

        out_t = pl.pallas_call(
            _nn_gather_kernel,
            out_shape=jax.ShapeDtypeStruct((fdim, n_pad), target_features.dtype),
            grid_spec=pltpu.PrefetchScalarGridSpec(
                num_scalar_prefetch=0,
                grid=grid,
                in_specs=[
                    pl.BlockSpec((4, tile_q), lambda i, j: (0, i)),     # query tile
                    pl.BlockSpec((4, tile_m), lambda i, j: (0, j)),     # target tile
                    pl.BlockSpec((fdim, tile_m), lambda i, j: (0, j)),  # feature tile
                ],
                out_specs=pl.BlockSpec((fdim, tile_q), lambda i, j: (0, i)),
                scratch_shapes=[
                    pltpu.VMEM((1, tile_q), jnp.float32),      # running min dist
                    pltpu.VMEM((fdim, tile_q), jnp.float32),   # running gathered feat
                ]),
            compiler_params=cparams,
        )(qT, tT, fT)

        query_features = out_t[:, :n].T
    else:
        idx_out = pl.pallas_call(
            _nn_index_kernel,
            out_shape=jax.ShapeDtypeStruct((1, n_pad), jnp.int32),
            grid_spec=pltpu.PrefetchScalarGridSpec(
                num_scalar_prefetch=0,
                grid=grid,
                in_specs=[
                    pl.BlockSpec((4, tile_q), lambda i, j: (0, i)),
                    pl.BlockSpec((4, tile_m), lambda i, j: (0, j)),
                ],
                out_specs=pl.BlockSpec((1, tile_q), lambda i, j: (0, i)),
                scratch_shapes=[
                    pltpu.VMEM((1, tile_q), jnp.float32),      # running min dist
                    pltpu.VMEM((1, tile_q), jnp.int32),        # running argmin idx
                ]),
            compiler_params=cparams,
        )(qT, tT)

        idx = idx_out[0, :n]
        query_features = jnp.take(target_features, idx, axis=0)

    return query_points, query_features


# --------------------------------------------------------------------------- #
# Pure-JAX reference + self-test
# --------------------------------------------------------------------------- #
def _reference(query_points, target_points, target_features, t_mask=None):
    d = jnp.sum((query_points[:, None, :] - target_points[None, :, :]) ** 2,
                axis=-1)
    if t_mask is not None:
        d = jnp.where(t_mask[None, :] > 0.5, d, jnp.inf)
    idx = jnp.argmin(d, axis=-1)
    return query_points, target_features[idx]


if __name__ == "__main__":
    key = jax.random.PRNGKey(0)
    k1, k2, k3, k4 = jax.random.split(key, 4)

    N, M, F = 16, 8, 32
    query_points = jax.random.normal(k1, (N, 3), jnp.float32)
    target_points = jax.random.normal(k2, (M, 3), jnp.float32)
    target_features = jax.random.normal(k3, (M, F), jnp.float32)

    # Unmasked, in-kernel one-hot gather path.
    qp_out, qf_out = upsample_block(query_points, target_points,
                                    target_features)
    jax.block_until_ready(qf_out)
    qp_ref, qf_ref = _reference(query_points, target_points, target_features)
    assert qp_out.shape == (N, 3) and qf_out.shape == (N, F)
    assert jnp.allclose(qp_out, qp_ref)
    assert jnp.allclose(qf_out, qf_ref, atol=1e-5, rtol=1e-5)

    # Masked-target path.
    t_mask = (jax.random.uniform(k4, (M,)) > 0.4).astype(jnp.float32)
    t_mask = t_mask.at[0].set(1.0)  # keep at least one valid target
    _, qf_out_m = upsample_block(query_points, target_points, target_features,
                                 t_mask=t_mask)
    jax.block_until_ready(qf_out_m)
    _, qf_ref_m = _reference(query_points, target_points, target_features,
                             t_mask=t_mask)
    assert jnp.allclose(qf_out_m, qf_ref_m, atol=1e-5, rtol=1e-5)

    # Index-carrying (large-F) path, forced on for coverage.
    _, qf_out_idx = upsample_block(query_points, target_points,
                                   target_features, t_mask=t_mask,
                                   gather_in_kernel=False)
    jax.block_until_ready(qf_out_idx)
    assert jnp.allclose(qf_out_idx, qf_ref_m, atol=1e-5, rtol=1e-5)

    print("KERNEL_OK")
</pallas_src>

<mosaic_0001>
module attributes {stable_mosaic.version = 11 : i64} {
  func.func @_nn_gather_kernel(%arg0: i32, %arg1: i32, %arg2: memref<4x128xf32, #tpu.memory_space<vmem>>, %arg3: memref<4x128xf32, #tpu.memory_space<vmem>>, %arg4: memref<32x128xf32, #tpu.memory_space<vmem>>, %arg5: memref<32x128xf32, #tpu.memory_space<vmem>>, %arg6: memref<1x128xf32, #tpu.memory_space<vmem>>, %arg7: memref<32x128xf32, #tpu.memory_space<vmem>>) attributes {dimension_semantics = [#tpu.dimension_semantics<parallel>, #tpu.dimension_semantics<arbitrary>], iteration_bounds = array<i64: 1, 1>, scalar_prefetch = 0 : i64, scratch_operands = 2 : i64, tpu.core_type = #tpu.core_type<tc>, window_params = [{transform_indices = @transform_0, window_bounds = array<i64: 4, 128>}, {transform_indices = @transform_1, window_bounds = array<i64: 4, 128>}, {transform_indices = @transform_2, window_bounds = array<i64: 32, 128>}, {transform_indices = @transform_3, window_bounds = array<i64: 32, 128>}]} {
    %c0_i32 = arith.constant 0 : i32
    %0 = arith.cmpi eq, %arg1, %c0_i32 : i32
    %1 = arith.extui %0 : i1 to i32
    %c0_i32_0 = arith.constant 0 : i32
    %2 = arith.cmpi ne, %1, %c0_i32_0 : i32
    scf.if %2 {
      %cst_21 = arith.constant 0x7F800000 : f32
      %37 = vector.broadcast %cst_21 : f32 to vector<1x128xf32>
      %c0_22 = arith.constant 0 : index
      %c0_23 = arith.constant 0 : index
      %38 = vector.load %arg6[%c0_22, %c0_23] : memref<1x128xf32, #tpu.memory_space<vmem>>, vector<1x128xf32>
      tpu.vector_store %arg6[%c0_22, %c0_23], %37 {strides = array<i32>} : memref<1x128xf32, #tpu.memory_space<vmem>>, vector<1x128xf32>,
      %cst_24 = arith.constant 0.000000e+00 : f32
      %39 = vector.broadcast %cst_24 : f32 to vector<32x128xf32>
      %c0_25 = arith.constant 0 : index
      %c0_26 = arith.constant 0 : index
      %40 = vector.load %arg7[%c0_25, %c0_26] : memref<32x128xf32, #tpu.memory_space<vmem>>, vector<32x128xf32>
      tpu.vector_store %arg7[%c0_25, %c0_26], %39 {strides = array<i32>} : memref<32x128xf32, #tpu.memory_space<vmem>>, vector<32x128xf32>,
    } else {
    }
    %c0 = arith.constant 0 : index
    %c0_1 = arith.constant 0 : index
    %3 = vector.load %arg2[%c0, %c0_1] : memref<4x128xf32, #tpu.memory_space<vmem>>, vector<4x128xf32>
    %c0_2 = arith.constant 0 : index
    %c0_3 = arith.constant 0 : index
    %4 = vector.load %arg3[%c0_2, %c0_3] : memref<4x128xf32, #tpu.memory_space<vmem>>, vector<4x128xf32>
    %c0_4 = arith.constant 0 : index
    %c0_5 = arith.constant 0 : index
    %5 = vector.load %arg4[%c0_4, %c0_5] : memref<32x128xf32, #tpu.memory_space<vmem>>, vector<32x128xf32>
    %cst = arith.constant dense<0.000000e+00> : vector<128x128xf32>
    %6 = tpu.matmul %4, %3, %cst {dimension_numbers = #tpu.dot_dimension_numbers<[0], [0], [1], [1], [0, 1, 1, 1], [], []>} : vector<4x128xf32>, vector<4x128xf32>, vector<128x128xf32> -> vector<128x128xf32>
    %cst_6 = arith.constant dense<0x7F800000> : vector<128xf32>
    %7 = vector.multi_reduction <minimumf>, %6, %cst_6 [0] : vector<128x128xf32> to vector<128xf32>
    %8 = vector.shape_cast %7 : vector<128xf32> to vector<1x128xf32>
    %9 = tpu.iota {dimensions = array<i32: 0>} : vector<128x1xi32>
    %10 = vector.broadcast %8 : vector<1x128xf32> to vector<128x128xf32>
    %11 = arith.cmpf ole, %6, %10 : vector<128x128xf32>
    %c128_i32 = arith.constant 128 : i32
    %12 = vector.shape_cast %9 : vector<128x1xi32> to vector<128x1xi32>
    %13 = vector.broadcast %12 : vector<128x1xi32> to vector<128x128xi32>
    %14 = vector.broadcast %c128_i32 : i32 to vector<128x128xi32>
    %15 = arith.select %11, %13, %14 : vector<128x128xi1>, vector<128x128xi32>
    %cst_7 = arith.constant dense<2147483647> : vector<128xi32>
    %16 = vector.multi_reduction <minsi>, %15, %cst_7 [0] : vector<128x128xi32> to vector<128xi32>
    %17 = vector.shape_cast %16 : vector<128xi32> to vector<1x128xi32>
    %18 = vector.broadcast %9 : vector<128x1xi32> to vector<128x128xi32>
    %19 = vector.broadcast %17 : vector<1x128xi32> to vector<128x128xi32>
    %20 = arith.cmpi eq, %18, %19 : vector<128x128xi32>
    %21 = arith.extui %20 : vector<128x128xi1> to vector<128x128xi32>
    %22 = arith.sitofp %21 : vector<128x128xi32> to vector<128x128xf32>
    %cst_8 = arith.constant dense<0.000000e+00> : vector<32x128xf32>
    %23 = tpu.matmul %5, %22, %cst_8 {dimension_numbers = #tpu.dot_dimension_numbers<[1], [0], [0], [1], [0, 0, 1, 1], [], []>} : vector<32x128xf32>, vector<128x128xf32>, vector<32x128xf32> -> vector<32x128xf32>
    %c0_9 = arith.constant 0 : index
    %c0_10 = arith.constant 0 : index
    %24 = vector.load %arg6[%c0_9, %c0_10] : memref<1x128xf32, #tpu.memory_space<vmem>>, vector<1x128xf32>
    %25 = arith.cmpf olt, %8, %24 : vector<1x128xf32>
    %c0_11 = arith.constant 0 : index
    %c0_12 = arith.constant 0 : index
    %26 = vector.load %arg6[%c0_11, %c0_12] : memref<1x128xf32, #tpu.memory_space<vmem>>, vector<1x128xf32>
    %27 = arith.select %25, %8, %26 : vector<1x128xi1>, vector<1x128xf32>
    %c0_13 = arith.constant 0 : index
    %c0_14 = arith.constant 0 : index
    %28 = vector.load %arg6[%c0_13, %c0_14] : memref<1x128xf32, #tpu.memory_space<vmem>>, vector<1x128xf32>
    tpu.vector_store %arg6[%c0_13, %c0_14], %27 {strides = array<i32>} : memref<1x128xf32, #tpu.memory_space<vmem>>, vector<1x128xf32>,
    %c0_15 = arith.constant 0 : index
    %c0_16 = arith.constant 0 : index
    %29 = vector.load %arg7[%c0_15, %c0_16] : memref<32x128xf32, #tpu.memory_space<vmem>>, vector<32x128xf32>
    %30 = vector.shape_cast %25 : vector<1x128xi1> to vector<1x128xi1>
    %31 = vector.broadcast %30 : vector<1x128xi1> to vector<32x128xi1>
    %32 = arith.select %31, %23, %29 : vector<32x128xi1>, vector<32x128xf32>
    %c0_17 = arith.constant 0 : index
    %c0_18 = arith.constant 0 : index
    %33 = vector.load %arg7[%c0_17, %c0_18] : memref<32x128xf32, #tpu.memory_space<vmem>>, vector<32x128xf32>
    tpu.vector_store %arg7[%c0_17, %c0_18], %32 {strides = array<i32>} : memref<32x128xf32, #tpu.memory_space<vmem>>, vector<32x128xf32>,
    %c0_i32_19 = arith.constant 0 : i32
    %34 = arith.cmpi eq, %arg1, %c0_i32_19 : i32
    %35 = arith.extui %34 : i1 to i32
    %c0_i32_20 = arith.constant 0 : i32
    %36 = arith.cmpi ne, %35, %c0_i32_20 : i32
    scf.if %36 {
      %c0_21 = arith.constant 0 : index
      %c0_22 = arith.constant 0 : index
      %37 = vector.load %arg7[%c0_21, %c0_22] : memref<32x128xf32, #tpu.memory_space<vmem>>, vector<32x128xf32>
      %c0_23 = arith.constant 0 : index
      %c0_24 = arith.constant 0 : index
      %38 = vector.load %arg5[%c0_23, %c0_24] : memref<32x128xf32, #tpu.memory_space<vmem>>, vector<32x128xf32>
      tpu.vector_store %arg5[%c0_23, %c0_24], %37 {strides = array<i32>} : memref<32x128xf32, #tpu.memory_space<vmem>>, vector<32x128xf32>,
    } else {
    }
    return
  }
  func.func @transform_0(%arg0: i32, %arg1: i32) -> (i32, i32) {
    %c0_i32 = arith.constant 0 : i32
    %c0_i32_0 = arith.constant 0 : i32
    return %c0_i32, %arg0 : i32, i32
  }
  func.func @transform_1(%arg0: i32, %arg1: i32) -> (i32, i32) {
    %c0_i32 = arith.constant 0 : i32
    %c0_i32_0 = arith.constant 0 : i32
    return %c0_i32, %arg1 : i32, i32
  }
  func.func @transform_2(%arg0: i32, %arg1: i32) -> (i32, i32) {
    %c0_i32 = arith.constant 0 : i32
    %c0_i32_0 = arith.constant 0 : i32
    return %c0_i32, %arg1 : i32, i32
  }
  func.func @transform_3(%arg0: i32, %arg1: i32) -> (i32, i32) {
    %c0_i32 = arith.constant 0 : i32
    %c0_i32_0 = arith.constant 0 : i32
    return %c0_i32, %arg0 : i32, i32
  }
}

</mosaic_0001>

<bundles_post_ra>
// kernel: tpu_custom_call.1
= control target key start
LH: loop header
LB: loop body
LE: loop exit
PB: predicated region body
PF: predicated region fallthrough
CT: control target
= control target key end

     0   :  { %8 = vsyncpa [#allocation5], 0  ;;  %s1161_s0 = inlined_call_operand.hbm [shape: f32[4,128], index: 0, kind: input, shape index: {}]   ;;  %s1162_s1 = inlined_call_operand.hbm [shape: f32[4,128], index: 1, kind: input, shape index: {}]   ;;  %s1163_s2 = inlined_call_operand.hbm [shape: f32[32,128], index: 2, kind: input, shape index: {}]   ;;  %s1164_s3 = inlined_call_operand.hbm [shape: f32[32,128], index: 3, kind: output, shape index: {}]  }
   0x1   :  { %9 = vsyncpa [#allocation8], 0 }
   0x2   :  { %10 = vsyncpa [#allocation6], 0  ;;  %s892_s12 = smov [#allocation7]   ;;  %s893_s14 = smov [#allocation4]  }
   0x3   :  { %s27_s13 = sshll.u32 %s892_s12, 4  ;;  %s17_s15 = sshll.u32 %s893_s14, 4  ;;  %s28_s13 = int_to_ptr.vmem [resolvable:$true] %s27_s13  ;;  %s18_s15 = int_to_ptr.vmem [resolvable:$true] %s17_s15 }
   0x4   :  { %s798_s18 = scalar_lea.hbm %s1162_s1, 64 }
   0x5   :  { %p799_p0 = scmp.ne.s32.totalorder %s1162_s1, %s798_s18  ;;  %p802_p1 = scmp.lt.u32.totalorder %s798_s18, %s1162_s1 }
   0x7   :  { %p804_p2 = pnand %p802_p1, %p799_p0 }
   0x9   :  { %807 = shalt.err (!%p804_p2)
}
   0xa   :  { %s808_s23 = scalar_lea.vmem %s28_s13, 64  ;;  %p813_p4 = scmp.lt.s32.totalorder %s28_s13, %s28_s13 }
   0xb   :  { %p809_p3 = scmp.ne.s32.totalorder %s28_s13, %s808_s23  ;;  %p814_p5 = scmp.lt.s32.totalorder %s808_s23, %s808_s23 }
   0xd   :  { %p815_p6 = por %p814_p5, %p813_p4 }
   0xf   :  { %p816_p7 = pnand %p815_p6, %p809_p3 }
  0x11   :  { %819 = shalt.err (!%p816_p7)
}
  0x12   :  { %30 = dma.hbm_to_vmem [thread:$0]  %s1162_s1, 64, %s28_s13, [#allocation8]  }
  0x13   :  { %s820_s28 = scalar_lea.hbm %s1161_s0, 64 }
  0x14   :  { %p821_p8 = scmp.ne.s32.totalorder %s1161_s0, %s820_s28  ;;  %p824_p9 = scmp.lt.u32.totalorder %s820_s28, %s1161_s0 }
  0x16   :  { %p826_p10 = pnand %p824_p9, %p821_p8 }
  0x18   :  { %829 = shalt.err (!%p826_p10)
}
  0x19   :  { %s830_s6 = scalar_lea.vmem %s18_s15, 64  ;;  %p835_p12 = scmp.lt.s32.totalorder %s18_s15, %s18_s15 }
  0x1a   :  { %p831_p11 = scmp.ne.s32.totalorder %s18_s15, %s830_s6  ;;  %p836_p13 = scmp.lt.s32.totalorder %s830_s6, %s830_s6 }
  0x1c   :  { %p837_p0 = por %p836_p13, %p835_p12 }
  0x1e   :  { %p838_p1 = pnand %p837_p0, %p831_p11 }
  0x20   :  { %841 = shalt.err (!%p838_p1)
}
  0x21   :  { %20 = dma.hbm_to_vmem [thread:$0]  %s1161_s0, 64, %s18_s15, [#allocation5]  }
  0x22   :  { %s894_s8 = smov [#allocation9]   ;;  %s842_s12 = scalar_lea.hbm %s1163_s2, 512 }
  0x23   :  { %s36_s9 = sshll.u32 %s894_s8, 4  ;;  %p843_p2 = scmp.ne.s32.totalorder %s1163_s2, %s842_s12  ;;  %s37_s9 = int_to_ptr.vmem [resolvable:$true] %s36_s9 }
  0x24   :  { %p846_p3 = scmp.lt.u32.totalorder %s842_s12, %s1163_s2 }
  0x26   :  { %p848_p4 = pnand %p846_p3, %p843_p2 }
  0x28   :  { %851 = shalt.err (!%p848_p4)
}
  0x29   :  { %s852_s18 = scalar_lea.vmem %s37_s9, 512  ;;  %p857_p6 = scmp.lt.s32.totalorder %s37_s9, %s37_s9 }
  0x2a   :  { %p853_p5 = scmp.ne.s32.totalorder %s37_s9, %s852_s18  ;;  %p858_p7 = scmp.lt.s32.totalorder %s852_s18, %s852_s18 }
  0x2c   :  { %p859_p8 = por %p858_p7, %p857_p6 }
  0x2e   :  { %p860_p9 = pnand %p859_p8, %p853_p5 }
  0x30   :  { %863 = shalt.err (!%p860_p9)
}
  0x31   :  { %s895_s0 = smov 128   ;;  %s896_s15 = smov 8  }
  0x32   :  { %42 = dma.hbm_to_vmem [thread:$0]  %s1163_s2, 512, %s37_s9, [#allocation8], %s895_s0, %s895_s0, %s896_s15  }
  0x33   :  { %886 = dma.done.wait [#allocation5], 64  }
  0x34   :  { %887 = vsyncadd [#allocation5], 4294967232 }
  0x35   :  { %888 = dma.done.wait [#allocation8], 576  }
  0x36   :  { %889 = vsyncadd [#allocation8], 4294966720  ;;  %v62_v0 = vld [vmem:[#allocation7] sm:$0xf]  ;;  %v61_v1 = vld [vmem:[#allocation4] sm:$0xf]  ;;  %v318_v53 = vlaneseq }
  0x37   :  { %67 = vxpose.xlu0.b32.start.end [1/1] (short) %v62_v0, 128  ;;  %vm148_vm0 = vcmask 1043456   ;;  %vm99_vm1 = vcmask 31744   ;;  %v897_v18 = vmov inf   ;;  %v63_v23 = vld [vmem:[#allocation9] sm:$0xff]  ;;  %v65_v24 = vld [vmem:[#allocation9 + $0x10] sm:$0xff]  ;;  %s900_s2 = smov [#allocation10]  }
  0x38   :  { %676 = vmatprep.subr.msk.mxu0 %vm148_vm0, %v61_v1  ;;  %56 = vst [vmem:[#allocation2] sm:$0x1] %v897_v18  ;;  %737 = vmatprep.mubr.f32.mxu1 %v65_v24  ;;  %v1003_v56 = vshrl.u32 %v318_v53, 7  ;;  %s577_s21 = sshll.u32 %s900_s2, 4  ;;  %s578_s21 = int_to_ptr.vmem [resolvable:$true] %s577_s21 }
  0x39   :  { %677 = vmatpush3.msk.msra.mxu0 %vm148_vm0, %v61_v1  ;;  %s864_s22 = scalar_lea.vmem %s578_s21, 512  ;;  %p869_p11 = scmp.lt.s32.totalorder %s578_s21, %s578_s21 }
  0x3a   :  { %v1006_v59 = vadd.s32 16, %v1003_v56  ;;  %v1009_v60 = vadd.s32 24, %v1003_v56  ;;  %v1012_v61 = vadd.s32 48, %v1003_v56  ;;  %v1015_v62 = vadd.s32 56, %v1003_v56  ;;  %p865_p10 = scmp.ne.s32.totalorder %s578_s21, %s864_s22  ;;  %p870_p12 = scmp.lt.s32.totalorder %s864_s22, %s864_s22 }
  0x3b   :  { %v1018_v63 = vadd.s32 80, %v1003_v56  ;;  %v1021_v0 = vadd.s32 88, %v1003_v56  ;;  %v550_v53 = vsub.s32 0, %v1003_v56 }
  0x3c   :  { %p871_p13 = por %p870_p12, %p869_p11 }
  0x3e   :  { %p872_p0 = pnand %p871_p13, %p865_p10 }
  0xb7   :  { %v83_v2 = vpop.trf.xlu0 }
  0xb8   :  { %678 = vmatprep.mubr.msk.f32.mxu0 %vm99_vm1, %v83_v2  ;;  %v1026_v2 = vadd.s32 112, %v1003_v56 }
  0xbb   :  { %v84_v3 = vpop.trf.xlu0 }
  0xbc   :  { %679 = vmatmul.mubr.msk.f32.vlgmr.msra.gmra.mrb[0].mxu0 %vm99_vm1, %v84_v3  ;;  %v1029_v3 = vadd.s32 120, %v1003_v56 }
  0xbf   :  { %v85_v4 = vpop.trf.xlu0 }
  0xc0   :  { %681 = vmatprep.mubr.msk.f32.mxu0 %vm99_vm1, %v85_v4  ;;  %v1032_v4 = vadd.s32 8, %v1003_v56 }
  0xc3   :  { %v86_v5 = vpop.trf.xlu0 }
  0xc4   :  { %682 = vmatmul.mubr.msk.f32.gmra.mrb[2].mxu0 %vm99_vm1, %v86_v5  ;;  %v1035_v5 = vadd.s32 32, %v1003_v56 }
  0xc7   :  { %v87_v6 = vpop.trf.xlu0 }
  0xc8   :  { %684 = vmatprep.mubr.msk.f32.mxu0 %vm99_vm1, %v87_v6  ;;  %v1038_v6 = vadd.s32 40, %v1003_v56 }
  0xcb   :  { %v88_v7 = vpop.trf.xlu0 }
  0xcc   :  { %685 = vmatmul.mubr.msk.f32.gmra.mrb[4].mxu0 %vm99_vm1, %v88_v7  ;;  %v1041_v7 = vadd.s32 64, %v1003_v56 }
  0xcf   :  { %v89_v8 = vpop.trf.xlu0 }
  0xd0   :  { %687 = vmatprep.mubr.msk.f32.mxu0 %vm99_vm1, %v89_v8  ;;  %v1044_v8 = vadd.s32 72, %v1003_v56 }
  0xd3   :  { %v90_v9 = vpop.trf.xlu0 }
  0xd4   :  { %688 = vmatmul.mubr.msk.f32.gmra.mrb[6].mxu0 %vm99_vm1, %v90_v9 }
  0xd7   :  { %v91_v10 = vpop.trf.xlu0 }
  0xd8   :  { %690 = vmatprep.mubr.msk.f32.mxu0 %vm99_vm1, %v91_v10 }
  0xdb   :  { %v92_v11 = vpop.trf.xlu0 }
  0xdc   :  { %691 = vmatmul.mubr.msk.f32.gmra.mrb[8].mxu0 %vm99_vm1, %v92_v11 }
  0xdf   :  { %v93_v12 = vpop.trf.xlu0 }
  0xe0   :  { %693 = vmatprep.mubr.msk.f32.mxu0 %vm99_vm1, %v93_v12 }
  0xe3   :  { %v94_v13 = vpop.trf.xlu0 }
  0xe4   :  { %694 = vmatmul.mubr.msk.f32.gmra.mrb[10].mxu0 %vm99_vm1, %v94_v13 }
  0xe7   :  { %v95_v14 = vpop.trf.xlu0 }
  0xe8   :  { %696 = vmatprep.mubr.msk.f32.mxu0 %vm99_vm1, %v95_v14 }
  0xeb   :  { %v96_v15 = vpop.trf.xlu0 }
  0xec   :  { %697 = vmatmul.mubr.msk.f32.gmra.mrb[12].mxu0 %vm99_vm1, %v96_v15 }
  0xef   :  { %v97_v16 = vpop.trf.xlu0 }
  0xf0   :  { %699 = vmatprep.mubr.msk.f32.mxu0 %vm99_vm1, %v97_v16 }
  0xf3   :  { %v98_v17 = vpop.trf.xlu0 }
  0xf4   :  { %700 = vmatmul.mubr.msk.f32.gmra.mrb[14].mxu0 %vm99_vm1, %v98_v17 }
  0xf5   :  { %734 = vmatprep.mubr.f32.mxu0 %v63_v23 }
 0x18f   :  { %v976_v19 = vpop.f32.mrb[0].mxu0 }
 0x190   :  { %v978_v20 = vpop.f32.mrb[1].mxu0 }
 0x197   :  { %v980_v21 = vpop.f32.mrb[2].mxu0 }
 0x198   :  { %v228_v22 = vpop.f32.mrb[3].mxu0 }
 0x19f   :  { %v982_v25 = vpop.f32.mrb[4].mxu0 }
 0x1a0   :  { %v298_v26 = vmin.f32 %v976_v19, %v982_v25  ;;  %v986_v27 = vpop.f32.mrb[5].mxu0 }
 0x1a1   :  { %v297_v28 = vmin.f32 %v978_v20, %v986_v27 }
 0x1a7   :  { %v689_v29 = vpop.f32.mrb[6].mxu0 }
 0x1a8   :  { %v300_v30 = vmin.f32 %v980_v21, %v689_v29  ;;  %v248_v31 = vpop.f32.mrb[7].mxu0 }
 0x1a9   :  { %v299_v32 = vmin.f32 %v228_v22, %v248_v31 }
 0x1af   :  { %v991_v33 = vpop.f32.mrb[8].mxu0 }
 0x1b0   :  { %v302_v34 = vmin.f32 %v298_v26, %v991_v33  ;;  %v994_v35 = vpop.f32.mrb[9].mxu0 }
 0x1b1   :  { %v301_v36 = vmin.f32 %v297_v28, %v994_v35 }
 0x1b7   :  { %v695_v37 = vpop.f32.mrb[10].mxu0 }
 0x1b8   :  { %v304_v38 = vmin.f32 %v300_v30, %v695_v37  ;;  %v268_v39 = vpop.f32.mrb[11].mxu0 }
 0x1b9   :  { %v303_v40 = vmin.f32 %v299_v32, %v268_v39 }
 0x1bf   :  { %v997_v41 = vpop.f32.mrb[12].mxu0 }
 0x1c0   :  { %v306_v42 = vmin.f32 %v302_v34, %v997_v41  ;;  %v1000_v43 = vpop.f32.mrb[13].mxu0 }
 0x1c1   :  { %v305_v44 = vmin.f32 %v301_v36, %v1000_v43 }
 0x1c3   :  { %v309_v45 = vmin.f32 %v305_v44, %v306_v42 }
 0x1c7   :  { %v701_v46 = vpop.f32.mrb[14].mxu0 }
 0x1c8   :  { %v308_v47 = vmin.f32 %v304_v38, %v701_v46  ;;  %v288_v48 = vpop.f32.mrb[15].mxu0 }
 0x1c9   :  { %v307_v49 = vmin.f32 %v303_v40, %v288_v48 }
 0x1cb   :  { %v310_v50 = vmin.f32 %v307_v49, %v308_v47 }
 0x1cd   :  { %v311_v51 = vmin.f32 %v309_v45, %v310_v50  ;;  %v898_v50 = vmov 1.0|1.0  }
 0x1cf   :  { %v312_v52 = vrot.slane %v311_v51, 4 }
 0x1d1   :  { %v313_v54 = vmin.f32 %v311_v51, %v312_v52  ;;  %v64_v51 = vld [vmem:[#allocation9 + $0x8] sm:$0xff]  ;;  %v66_v52 = vld [vmem:[#allocation9 + $0x18] sm:$0xff] }
 0x1d3   :  { %v314_v55 = vrot.slane %v313_v54, 2 }
 0x1d5   :  { %v315_v57 = vmin.f32 %v313_v54, %v314_v55  ;;  %v899_v54 = vmov 0  }
 0x1d7   :  { %v316_v58 = vrot.slane %v315_v57, 1 }
 0x1d9   :  { %v1023_v1 = vmin.f32 %v315_v57, %v316_v58 }
 0x1db   :  { %vm337_vm2 = vcmp.le.f32.partialorder %v228_v22, %v1023_v1  ;;  %vm338_vm3 = vcmp.le.f32.partialorder %v980_v21, %v1023_v1  ;;  %vm341_vm4 = vcmp.le.f32.partialorder %v248_v31, %v1023_v1  ;;  %vm342_vm5 = vcmp.le.f32.partialorder %v689_v29, %v1023_v1  ;;  %v1095_v31 = vld [vmem:[#allocation2] sm:$0x1] }
 0x1dc   :  { %vm345_vm6 = vcmp.le.f32.partialorder %v268_v39, %v1023_v1  ;;  %vm346_vm7 = vcmp.le.f32.partialorder %v695_v37, %v1023_v1  ;;  %vm349_vm8 = vcmp.le.f32.partialorder %v288_v48, %v1023_v1  ;;  %vm350_vm9 = vcmp.le.f32.partialorder %v701_v46, %v1023_v1 }
 0x1dd   :  { %v353_v9 = vsel %vm337_vm2, %v1006_v59, 128  ;;  %v354_v10 = vsel %vm338_vm3, %v1009_v60, 128  ;;  %v357_v11 = vsel %vm341_vm4, %v1012_v61, 128  ;;  %v358_v12 = vsel %vm342_vm5, %v1015_v62, 128 }
 0x1de   :  { %v361_v13 = vsel %vm345_vm6, %v1018_v63, 128  ;;  %v362_v14 = vsel %vm346_vm7, %v1021_v0, 128  ;;  %v365_v15 = vsel %vm349_vm8, %v1026_v2, 128  ;;  %v366_v16 = vsel %vm350_vm9, %v1029_v3, 128 }
 0x1df   :  { %vm371_vm10 = vcmp.lt.s32.totalorder %v353_v9, %v357_v11  ;;  %vm373_vm11 = vcmp.lt.s32.totalorder %v354_v10, %v358_v12  ;;  %vm335_vm12 = vcmp.le.f32.partialorder %v978_v20, %v1023_v1  ;;  %vm336_vm13 = vcmp.le.f32.partialorder %v976_v19, %v1023_v1 }
 0x1e0   :  { %v372_v17 = vsel %vm371_vm10, %v353_v9, %v357_v11  ;;  %v374_v18 = vsel %vm373_vm11, %v354_v10, %v358_v12  ;;  %vm339_vm14 = vcmp.le.f32.partialorder %v986_v27, %v1023_v1  ;;  %vm340_vm15 = vcmp.le.f32.partialorder %v982_v25, %v1023_v1 }
 0x1e1   :  { %vm379_vm0 = vcmp.lt.s32.totalorder %v372_v17, %v361_v13  ;;  %vm381_vm1 = vcmp.lt.s32.totalorder %v374_v18, %v362_v14  ;;  %vm343_vm2 = vcmp.le.f32.partialorder %v994_v35, %v1023_v1  ;;  %vm344_vm3 = vcmp.le.f32.partialorder %v991_v33, %v1023_v1 }
 0x1e2   :  { %v380_v21 = vsel %vm379_vm0, %v372_v17, %v361_v13  ;;  %v382_v22 = vsel %vm381_vm1, %v374_v18, %v362_v14  ;;  %vm347_vm4 = vcmp.le.f32.partialorder %v1000_v43, %v1023_v1  ;;  %vm348_vm5 = vcmp.le.f32.partialorder %v997_v41, %v1023_v1 }
 0x1e3   :  { %vm387_vm6 = vcmp.lt.s32.totalorder %v380_v21, %v365_v15  ;;  %vm389_vm7 = vcmp.lt.s32.totalorder %v382_v22, %v366_v16  ;;  %v351_v23 = vsel %vm335_vm12, %v1003_v56, 128  ;;  %v352_v24 = vsel %vm336_vm13, %v1032_v4, 128 }
 0x1e4   :  { %v388_v26 = vsel %vm387_vm6, %v380_v21, %v365_v15  ;;  %v390_v28 = vsel %vm389_vm7, %v382_v22, %v366_v16  ;;  %v355_v29 = vsel %vm339_vm14, %v1035_v5, 128  ;;  %v356_v30 = vsel %vm340_vm15, %v1038_v6, 128 }
 0x1e5   :  { %vm393_vm8 = vcmp.lt.s32.totalorder %v388_v26, %v390_v28  ;;  %v1098_v20 = vadd.s32 96, %v1003_v56  ;;  %v1101_v19 = vadd.s32 104, %v1003_v56  ;;  %v359_v27 = vsel %vm343_vm2, %v1041_v7, 128 }
 0x1e6   :  { %v394_v32 = vsel %vm393_vm8, %v388_v26, %v390_v28  ;;  %vm367_vm9 = vcmp.lt.s32.totalorder %v351_v23, %v355_v29  ;;  %vm369_vm10 = vcmp.lt.s32.totalorder %v352_v24, %v356_v30  ;;  %v360_v25 = vsel %vm344_vm3, %v1044_v8, 128 }
 0x1e7   :  { %v368_v34 = vsel %vm367_vm9, %v351_v23, %v355_v29  ;;  %v370_v36 = vsel %vm369_vm10, %v352_v24, %v356_v30  ;;  %vm540_vm11 = vcmp.lt.f32.partialorder %v1023_v1, %v1095_v31  ;;  %v363_v37 = vsel %vm347_vm4, %v1098_v20, 128 }
 0x1e8   :  { %vm375_vm12 = vcmp.lt.s32.totalorder %v368_v34, %v359_v27  ;;  %vm377_vm13 = vcmp.lt.s32.totalorder %v370_v36, %v360_v25  ;;  %v541_v35 = vsel %vm540_vm11, %v1023_v1, %v1095_v31  ;;  %v364_v33 = vsel %vm348_vm5, %v1101_v19, 128 }
 0x1e9   :  { %v376_v38 = vsel %vm375_vm12, %v368_v34, %v359_v27  ;;  %v378_v39 = vsel %vm377_vm13, %v370_v36, %v360_v25  ;;  %542 = vst [vmem:[#allocation2] sm:$0x1] %v541_v35  ;;  %v547_v55 = vsel %vm540_vm11, 1, %v899_v54 }
 0x1ea   :  { %vm383_vm14 = vcmp.lt.s32.totalorder %v376_v38, %v363_v37  ;;  %vm385_vm15 = vcmp.lt.s32.totalorder %v378_v39, %v364_v33  ;;  %v551_v57 = vrot.slane %v547_v55, %v550_v53 }
 0x1eb   :  { %v384_v40 = vsel %vm383_vm14, %v376_v38, %v363_v37  ;;  %v386_v42 = vsel %vm385_vm15, %v378_v39, %v364_v33 }
 0x1ec   :  { %vm391_vm0 = vcmp.lt.s32.totalorder %v384_v40, %v386_v42 }
 0x1ed   :  { %v392_v44 = vsel %vm391_vm0, %v384_v40, %v386_v42 }
 0x1ee   :  { %vm395_vm1 = vcmp.lt.s32.totalorder %v392_v44, %v394_v32 }
 0x1ef   :  { %v396_v45 = vsel %vm395_vm1, %v392_v44, %v394_v32 }
 0x1f0   :  { %v397_v46 = vrot.slane %v396_v45, 4 }
 0x1f2   :  { %vm398_vm2 = vcmp.lt.s32.totalorder %v396_v45, %v397_v46 }
 0x1f3   :  { %v399_v43 = vsel %vm398_vm2, %v396_v45, %v397_v46 }
 0x1f4   :  { %v400_v47 = vrot.slane %v399_v43, 2 }
 0x1f6   :  { %vm401_vm3 = vcmp.lt.s32.totalorder %v399_v43, %v400_v47 }
 0x1f7   :  { %v402_v48 = vsel %vm401_vm3, %v399_v43, %v400_v47 }
 0x1f8   :  { %v403_v49 = vrot.slane %v402_v48, 1 }
 0x1fa   :  { %vm404_vm4 = vcmp.lt.s32.totalorder %v402_v48, %v403_v49 }
 0x1fb   :  { %v405_v41 = vsel %vm404_vm4, %v402_v48, %v403_v49 }
 0x1fc   :  { %vm406_vm5 = vcmp.eq.s32.totalorder %v1003_v56, %v405_v41  ;;  %vm407_vm6 = vcmp.eq.s32.totalorder %v1032_v4, %v405_v41  ;;  %vm408_vm7 = vcmp.eq.s32.totalorder %v1006_v59, %v405_v41  ;;  %vm409_vm8 = vcmp.eq.s32.totalorder %v1009_v60, %v405_v41 }
 0x1fd   :  { %vm740_vm9 = vmpackc.low %vm407_vm6, %vm406_vm5  ;;  %vm410_vm12 = vcmp.eq.s32.totalorder %v1035_v5, %v405_v41  ;;  %vm411_vm13 = vcmp.eq.s32.totalorder %v1038_v6, %v405_v41  ;;  %vm412_vm15 = vcmp.eq.s32.totalorder %v1012_v61, %v405_v41  ;;  %vm413_vm0 = vcmp.eq.s32.totalorder %v1015_v62, %v405_v41 }
 0x1fe   :  { %741 = vmatprep.subr.msk.bf16.mxu0 %vm740_vm9, %v898_v50  ;;  %772 = vmatprep.subr.msk.bf16.mxu1 %vm740_vm9, %v898_v50  ;;  %vm744_vm10 = vmpackc.low %vm409_vm8, %vm408_vm7  ;;  %vm414_vm2 = vcmp.eq.s32.totalorder %v1041_v7, %v405_v41  ;;  %vm415_vm3 = vcmp.eq.s32.totalorder %v1044_v8, %v405_v41  ;;  %vm416_vm5 = vcmp.eq.s32.totalorder %v1018_v63, %v405_v41 }
 0x1ff   :  { %743 = vmatpush3.bf16.msk.msra.mxu0 %vm740_vm9, %v898_v50  ;;  %780 = vmatpush3.bf16.msk.msra.mxu1 %vm740_vm9, %v898_v50  ;;  %vm748_vm14 = vmpackc.low %vm411_vm13, %vm410_vm12  ;;  %vm417_vm6 = vcmp.eq.s32.totalorder %v1021_v0, %v405_v41  ;;  %vm418_vm8 = vcmp.eq.s32.totalorder %v1098_v20, %v405_v41  ;;  %vm419_vm9 = vcmp.eq.s32.totalorder %v1101_v19, %v405_v41 }
 0x200   :  { %745 = vmatprep.subr.msk.bf16.mxu0 %vm744_vm10, %v898_v50  ;;  %773 = vmatprep.subr.msk.bf16.mxu1 %vm744_vm10, %v898_v50  ;;  %vm752_vm1 = vmpackc.low %vm413_vm0, %vm412_vm15  ;;  %vm420_vm12 = vcmp.eq.s32.totalorder %v1026_v2, %v405_v41  ;;  %vm421_vm13 = vcmp.eq.s32.totalorder %v1029_v3, %v405_v41  ;;  %vm552_vm15 = vcmp.eq.s32.totalorder %v551_v57, 1 }
 0x201   :  { %vm756_vm4 = vmpackc.low %vm415_vm3, %vm414_vm2 }
 0x202   :  { %vm760_vm7 = vmpackc.low %vm417_vm6, %vm416_vm5 }
 0x203   :  { %747 = vmatpush3.bf16.msk.msra.mxu0 %vm744_vm10, %v898_v50  ;;  %781 = vmatpush3.bf16.msk.msra.mxu1 %vm744_vm10, %v898_v50  ;;  %vm764_vm10 = vmpackc.low %vm419_vm9, %vm418_vm8 }
 0x204   :  { %749 = vmatprep.subr.msk.bf16.mxu0 %vm748_vm14, %v898_v50  ;;  %774 = vmatprep.subr.msk.bf16.mxu1 %vm748_vm14, %v898_v50 }
 0x207   :  { %751 = vmatpush3.bf16.msk.msra.mxu0 %vm748_vm14, %v898_v50  ;;  %782 = vmatpush3.bf16.msk.msra.mxu1 %vm748_vm14, %v898_v50  ;;  %vm768_vm14 = vmpackc.low %vm421_vm13, %vm420_vm12 }
 0x208   :  { %753 = vmatprep.subr.msk.bf16.mxu0 %vm752_vm1, %v898_v50  ;;  %775 = vmatprep.subr.msk.bf16.mxu1 %vm752_vm1, %v898_v50 }
 0x20b   :  { %755 = vmatpush3.bf16.msk.msra.mxu0 %vm752_vm1, %v898_v50  ;;  %783 = vmatpush3.bf16.msk.msra.mxu1 %vm752_vm1, %v898_v50 }
 0x20c   :  { %757 = vmatprep.subr.msk.bf16.mxu0 %vm756_vm4, %v898_v50  ;;  %776 = vmatprep.subr.msk.bf16.mxu1 %vm756_vm4, %v898_v50 }
 0x20f   :  { %759 = vmatpush3.bf16.msk.msra.mxu0 %vm756_vm4, %v898_v50  ;;  %784 = vmatpush3.bf16.msk.msra.mxu1 %vm756_vm4, %v898_v50 }
 0x210   :  { %761 = vmatprep.subr.msk.bf16.mxu0 %vm760_vm7, %v898_v50  ;;  %777 = vmatprep.subr.msk.bf16.mxu1 %vm760_vm7, %v898_v50 }
 0x213   :  { %763 = vmatpush3.bf16.msk.msra.mxu0 %vm760_vm7, %v898_v50  ;;  %785 = vmatpush3.bf16.msk.msra.mxu1 %vm760_vm7, %v898_v50 }
 0x214   :  { %765 = vmatprep.subr.msk.bf16.mxu0 %vm764_vm10, %v898_v50  ;;  %778 = vmatprep.subr.msk.bf16.mxu1 %vm764_vm10, %v898_v50 }
 0x217   :  { %767 = vmatpush3.bf16.msk.msra.mxu0 %vm764_vm10, %v898_v50  ;;  %786 = vmatpush3.bf16.msk.msra.mxu1 %vm764_vm10, %v898_v50 }
 0x218   :  { %769 = vmatprep.subr.msk.bf16.mxu0 %vm768_vm14, %v898_v50  ;;  %779 = vmatprep.subr.msk.bf16.mxu1 %vm768_vm14, %v898_v50 }
 0x21b   :  { %771 = vmatpush3.bf16.msk.msra.mxu0 %vm768_vm14, %v898_v50  ;;  %787 = vmatpush3.bf16.msk.msra.mxu1 %vm768_vm14, %v898_v50 }
 0x21e   :  { %735 = vmatmul.mubr.f32.vlgmr.msra.gmra.mrb[16].mxu0 %v64_v51  ;;  %738 = vmatmul.mubr.f32.vlgmr.msra.gmra.mrb[0].mxu1 %v66_v52 }
 0x2f1   :  { %v736_v58 = vpop.f32.mrb[16].mxu0  ;;  %v739_v59 = vpop.f32.mrb[0].mxu1 }
 0x2f2   :  { %v554_v60 = vsel %vm552_vm15, %v736_v58, 0.0  ;;  %v556_v61 = vsel %vm552_vm15, %v739_v59, 0.0  ;;  %v520_v62 = vpop.f32.mrb[17].mxu0  ;;  %v530_v63 = vpop.f32.mrb[1].mxu1 }
 0x2f3   :  { %569 = vst [vmem:[#allocation10 + $0x8] sm:$0xff] %v554_v60  ;;  %571 = vst [vmem:[#allocation10 + $0x18] sm:$0xff] %v556_v61  ;;  %v553_v0 = vsel %vm552_vm15, %v520_v62, 0.0  ;;  %v555_v56 = vsel %vm552_vm15, %v530_v63, 0.0 }
 0x2f4   :  { %568 = vst [vmem:[#allocation10] sm:$0xff] %v553_v0  ;;  %570 = vst [vmem:[#allocation10 + $0x10] sm:$0xff] %v555_v56 }
 0x2f5   :  { %875 = shalt.err (!%p872_p0)
}
 0x2f6   :  { %s876_s25 = scalar_lea.hbm %s1164_s3, 512 }
 0x2f7   :  { %p877_p1 = scmp.ne.s32.totalorder %s1164_s3, %s876_s25  ;;  %p880_p2 = scmp.lt.u32.totalorder %s876_s25, %s1164_s3 }
 0x2f9   :  { %p882_p3 = pnand %p880_p2, %p877_p1 }
 0x2fb   :  { %885 = shalt.err (!%p882_p3)
}
 0x2fc   :  { %583 = dma.vmem_to_hbm [thread:$0]  %s578_s21, 512, %s1164_s3, [#allocation6], %s895_s0, %s895_s0, %s896_s15  }
 0x2fd   :  { %890 = dma.done.wait [#allocation6], 512  }
 0x2fe   :  { %891 = vsyncadd [#allocation6], 4294966784 }
 0x2ff   :  { %587 = vsyncpa [#allocation5], 1 }
 0x300   :  { %588 = vsyncpa [#allocation8], 1 }
 0x301   :  { %589 = vsyncpa [#allocation6], 1 }

</bundles_post_ra>
